<compile_context>
chip_gen: v6e
topology: v6e:2x2x1
jax: 0.10.0
libtpu: 0.0.40
codegen_flags: <defaults>
</compile_context>

<pallas_src>
import functools
import math

import jax
import jax.numpy as jnp
from jax.experimental import pallas as pl
from jax.experimental.pallas import tpu as pltpu


def _sce_kernel(pred_ref, labels_ref, out_ref, acc_ref, *,
                ce_scale, rce_scale, n_total):
    """One (C, TILE_N) logits tile -> accumulate weighted per-sample losses."""
    i = pl.program_id(1)                      # inner (arbitrary) accumulation axis
    inner = pl.num_programs(1)

    @pl.when(i == 0)
    def _init():
        acc_ref[...] = jnp.zeros_like(acc_ref)

    x = pred_ref[...].astype(jnp.float32)     # (C, TILE_N) logits
    labels = labels_ref[...]                  # (1, TILE_N) int32
    c, tile_n = x.shape

    # one-hot via 2-D iota compare; classes on sublanes, batch on lanes.
    class_ids = jax.lax.broadcasted_iota(jnp.int32, (c, tile_n), 0)
    one_hot = class_ids == labels             # (C, TILE_N) bool

    # --- shared softmax pieces: one exp pass; log/recip only on (1, TILE_N) --
    m = jnp.max(x, axis=0, keepdims=True)     # (1, TILE_N)
    e = jnp.exp(x - m)                        # (C, TILE_N)   single EUP pass
    sum_e = jnp.sum(e, axis=0, keepdims=True)
    inv_sum = 1.0 / sum_e                     # (1, TILE_N)   factored reciprocal
    lse = jnp.log(sum_e) + m                  # (1, TILE_N)

    # --- CE: -log_softmax at the label class = lse - logit[label] -----------
    pred_y = jnp.sum(jnp.where(one_hot, x, 0.0), axis=0, keepdims=True)
    ce_col = lse - pred_y                     # (1, TILE_N)

    # --- RCE factored: -sum_j p_j*log(clip(onehot_j,1e-4,1))
    #                 = -log(1e-4) * sum_{j != y} clip(p_j, 1e-7, 1) ----------
    p = jnp.clip(e * inv_sum, 1e-7, 1.0)      # matches torch.clamp semantics
    off_label = jnp.sum(jnp.where(one_hot, 0.0, p), axis=0, keepdims=True)

    # alpha/beta (and -log(1e-4)) folded into one weighted column.
    weighted = ce_scale * ce_col + rce_scale * off_label      # (1, TILE_N)

    # Mask padded tail columns and clamp-duplicated blocks (garbage logits can
    # be inf/NaN there -> must zero before the reduction).
    col_start = (pl.program_id(0) * inner + i) * tile_n
    col_ids = col_start + jax.lax.broadcasted_iota(jnp.int32, (1, tile_n), 1)
    weighted = jnp.where(col_ids < n_total, weighted, 0.0)

    # Lane-reduce (XLU) into the tiny resident scratch accumulator.
    acc_ref[...] += jnp.sum(weighted, axis=1, keepdims=True)   # (1, 1)

    @pl.when(i == inner - 1)
    def _done():
        # Broadcast the per-slice sum into the (8, 128) output block.
        out_ref[...] = jnp.zeros_like(out_ref) + acc_ref[...]


def _choose_tile_cols(n, c, itemsize):
    """Lane-tile width from a VMEM budget that includes in-kernel temporaries.

    Counts: double-buffered pred (2*c*itemsize/col) and labels (2*4/col) DMA
    slabs, ~6 (C, tile) f32 temporaries (upcast, e, p, selects, clip temps) and
    ~8 (1, tile) f32 temporaries.  Budget ~20 MiB keeps us inside v7x's 32 MiB
    scoped VMEM with headroom; the 32K-column cap keeps per-step compute a few
    microseconds so the ~0.35us/step grid overhead is well amortized.
    """
    bytes_per_col = c * (2 * itemsize + 6 * 4) + (2 * 4 + 8 * 4)
    budget = 20 * 1024 * 1024
    max_cols = max(128, (budget // bytes_per_col) // 128 * 128)
    return min(32768, max_cols)


def _default_num_parallel():
    """2 on multi-TensorCore / megacore chips (v4, v5p, v7x); 1 on v5e/v6e."""
    try:
        kind = jax.devices()[0].device_kind.lower()
    except Exception:
        return 1
    if "v4" in kind or "v7" in kind:
        return 2
    if "v5" in kind and "lite" not in kind and "5e" not in kind:
        return 2                               # v5p megacore
    return 1


def sce_loss(pred, labels, *, alpha, beta, num_classes, tile_cols=None):
    """Symmetric Cross Entropy loss. pred: (N, C) logits; labels: (N,) ints."""
    n, c = pred.shape
    assert c == num_classes

    if tile_cols is None:
        tile_cols = _choose_tile_cols(n, c, pred.dtype.itemsize)
    tile_n = n if n <= tile_cols else tile_cols
    if tile_n < n:
        assert tile_n % 128 == 0, "tile_cols must be a multiple of 128 when tiling"

    num_tiles = pl.cdiv(n, tile_n)
    num_parallel = min(_default_num_parallel(), num_tiles)
    inner = pl.cdiv(num_tiles, num_parallel)
    last_block = num_tiles - 1
    needs_clamp = num_parallel * inner != num_tiles

    def in_index_map(p, i):
        bi = p * inner + i
        if needs_clamp:
            # Duplicate the last block for overhanging grid steps; the kernel's
            # column mask zeroes their contribution.
            bi = jnp.minimum(bi, last_block)
        return (0, bi)

    # Lane-dense layout: batch on the lane axis, native dtype over the DMA.
    # Under jit, allow_input_fusion lets XLA fuse this transpose into the
    # pallas_call's input fetch instead of materializing a second HBM pass.
    pred_t = jnp.transpose(pred)                        # (C, N)
    labels_2d = labels.astype(jnp.int32).reshape(1, n)  # (1, N)

    kernel = functools.partial(
        _sce_kernel,
        ce_scale=float(alpha),
        rce_scale=float(beta) * (-math.log(1e-4)),
        n_total=n,
    )

    itemsize = pred.dtype.itemsize
    cost = pl.CostEstimate(
        flops=14 * n * c,
        transcendentals=n * c + 2 * n,
        bytes_accessed=n * c * itemsize + n * 4 + num_parallel * 8 * 128 * 4,
    )

    partials = pl.pallas_call(
        kernel,
        out_shape=jax.ShapeDtypeStruct((num_parallel * 8, 128), jnp.float32),
        grid_spec=pltpu.PrefetchScalarGridSpec(
            num_scalar_prefetch=0,
            grid=(num_parallel, inner),
            in_specs=[
                pl.BlockSpec((c, tile_n), in_index_map),   # pred tile (C, TILE_N)
                pl.BlockSpec((1, tile_n), in_index_map),   # labels tile (1, TILE_N)
            ],
            out_specs=pl.BlockSpec((8, 128), lambda p, i: (p, 0)),
            scratch_shapes=[pltpu.VMEM((1, 1), jnp.float32)],
        ),
        compiler_params=pltpu.CompilerParams(
            dimension_semantics=("parallel", "arbitrary"),
            vmem_limit_bytes=32 * 1024 * 1024,
            allow_input_fusion=[True, False],
        ),
        cost_estimate=cost,
    )(pred_t, labels_2d)

    # One scalar per parallel slice (broadcast across its (8, 128) block).
    total = jnp.sum(partials[::8, 0])
    return total * (1.0 / n)


def sce_loss_ref(pred, labels, *, alpha, beta, num_classes):
    """Pure-JAX reference mirroring the PyTorch forward exactly."""
    pred = pred.astype(jnp.float32)
    log_sm = jax.nn.log_softmax(pred, axis=1)
    ce = -jnp.mean(jnp.take_along_axis(log_sm, labels[:, None], axis=1))
    p = jnp.clip(jax.nn.softmax(pred, axis=1), 1e-7, 1.0)
    one_hot = jax.nn.one_hot(labels, num_classes, dtype=jnp.float32)
    one_hot = jnp.clip(one_hot, 1e-4, 1.0)
    rce = -jnp.sum(p * jnp.log(one_hot), axis=1)
    return alpha * ce + beta * jnp.mean(rce)


if __name__ == "__main__":
    alpha, beta, num_classes = 0.1, 1.0, 3

    key = jax.random.PRNGKey(0)
    k1, k2, k3, k4 = jax.random.split(key, 4)

    # Small test matching the module's (batch, num_classes) logits; jitted so
    # the wrapper transpose is eligible for input fusion into the kernel.
    batch = 8
    pred = jax.random.normal(k1, (batch, num_classes), dtype=jnp.float32)
    labels = jax.random.randint(k2, (batch,), 0, num_classes, dtype=jnp.int32)
    sce_jit = jax.jit(functools.partial(
        sce_loss, alpha=alpha, beta=beta, num_classes=num_classes))
    loss = jax.block_until_ready(sce_jit(pred, labels))
    ref = sce_loss_ref(pred, labels, alpha=alpha, beta=beta,
                       num_classes=num_classes)
    assert jnp.allclose(loss, ref, rtol=1e-5, atol=1e-5), (loss, ref)

    # Second config exercising the tiled path: 4 tiles of 128 columns with a
    # masked partial tail tile (500 % 128 != 0), run eagerly.
    batch2 = 500
    pred2 = jax.random.normal(k3, (batch2, num_classes), dtype=jnp.float32)
    labels2 = jax.random.randint(k4, (batch2,), 0, num_classes, dtype=jnp.int32)
    loss2 = jax.block_until_ready(
        sce_loss(pred2, labels2, alpha=alpha, beta=beta,
                 num_classes=num_classes, tile_cols=128))
    ref2 = sce_loss_ref(pred2, labels2, alpha=alpha, beta=beta,
                        num_classes=num_classes)
    assert jnp.allclose(loss2, ref2, rtol=1e-5, atol=1e-5), (loss2, ref2)

    print("KERNEL_OK")
</pallas_src>

<mosaic_0001>
module attributes {stable_mosaic.version = 11 : i64} {
  func.func @_sce_kernel(%arg0: i32, %arg1: i32, %arg2: memref<3x8xf32, #tpu.memory_space<vmem>>, %arg3: memref<1x8xi32, #tpu.memory_space<vmem>>, %arg4: memref<8x128xf32, #tpu.memory_space<vmem>>, %arg5: memref<1x1xf32, #tpu.memory_space<vmem>>) attributes {dimension_semantics = [#tpu.dimension_semantics<parallel>, #tpu.dimension_semantics<arbitrary>], iteration_bounds = array<i64: 1, 1>, scalar_prefetch = 0 : i64, scratch_operands = 1 : i64, tpu.core_type = #tpu.core_type<tc>, window_params = [{transform_indices = @transform_0, window_bounds = array<i64: 3, 8>}, {transform_indices = @transform_1, window_bounds = array<i64: 1, 8>}, {transform_indices = @transform_2, window_bounds = array<i64: 8, 128>}]} {
    %c0_i32 = arith.constant 0 : i32
    %0 = arith.cmpi eq, %arg1, %c0_i32 : i32
    %1 = arith.extui %0 : i1 to i32
    %c0_i32_0 = arith.constant 0 : i32
    %2 = arith.cmpi ne, %1, %c0_i32_0 : i32
    scf.if %2 {
      %cst_23 = arith.constant 0.000000e+00 : f32
      %57 = vector.broadcast %cst_23 : f32 to vector<1x1xf32>
      %c0_24 = arith.constant 0 : index
      %c0_25 = arith.constant 0 : index
      %58 = vector.load %arg5[%c0_24, %c0_25] : memref<1x1xf32, #tpu.memory_space<vmem>>, vector<1x1xf32>
      tpu.vector_store %arg5[%c0_24, %c0_25], %57 {strides = array<i32>} : memref<1x1xf32, #tpu.memory_space<vmem>>, vector<1x1xf32>,
    } else {
    }
    %c0 = arith.constant 0 : index
    %c0_1 = arith.constant 0 : index
    %3 = vector.load %arg2[%c0, %c0_1] : memref<3x8xf32, #tpu.memory_space<vmem>>, vector<3x8xf32>
    %c0_2 = arith.constant 0 : index
    %c0_3 = arith.constant 0 : index
    %4 = vector.load %arg3[%c0_2, %c0_3] : memref<1x8xi32, #tpu.memory_space<vmem>>, vector<1x8xi32>
    %5 = tpu.iota {dimensions = array<i32: 0>} : vector<3x8xi32>
    %6 = vector.broadcast %4 : vector<1x8xi32> to vector<3x8xi32>
    %7 = arith.cmpi eq, %5, %6 : vector<3x8xi32>
    %cst = arith.constant dense<0xFF800000> : vector<8xf32>
    %8 = vector.multi_reduction <maximumf>, %3, %cst [0] : vector<3x8xf32> to vector<8xf32>
    %9 = vector.shape_cast %8 : vector<8xf32> to vector<1x8xf32>
    %10 = vector.broadcast %9 : vector<1x8xf32> to vector<3x8xf32>
    %11 = arith.subf %3, %10 : vector<3x8xf32>
    %12 = math.exp %11 : vector<3x8xf32>
    %cst_4 = arith.constant dense<0.000000e+00> : vector<8xf32>
    %13 = vector.multi_reduction <add>, %12, %cst_4 [0] : vector<3x8xf32> to vector<8xf32>
    %14 = vector.shape_cast %13 : vector<8xf32> to vector<1x8xf32>
    %cst_5 = arith.constant 1.000000e+00 : f32
    %15 = vector.broadcast %cst_5 : f32 to vector<1x8xf32>
    %16 = arith.divf %15, %14 : vector<1x8xf32>
    %17 = math.log %14 : vector<1x8xf32>
    %18 = arith.addf %17, %9 : vector<1x8xf32>
    %cst_6 = arith.constant 0.000000e+00 : f32
    %19 = vector.broadcast %cst_6 : f32 to vector<3x8xf32>
    %20 = arith.select %7, %3, %19 : vector<3x8xi1>, vector<3x8xf32>
    %cst_7 = arith.constant dense<0.000000e+00> : vector<8xf32>
    %21 = vector.multi_reduction <add>, %20, %cst_7 [0] : vector<3x8xf32> to vector<8xf32>
    %22 = vector.shape_cast %21 : vector<8xf32> to vector<1x8xf32>
    %23 = arith.subf %18, %22 : vector<1x8xf32>
    %24 = vector.broadcast %16 : vector<1x8xf32> to vector<3x8xf32>
    %25 = arith.mulf %12, %24 : vector<3x8xf32>
    %cst_8 = arith.constant 1.000000e-07 : f32
    %cst_9 = arith.constant 1.000000e+00 : f32
    %26 = vector.broadcast %cst_8 : f32 to vector<3x8xf32>
    %27 = arith.maximumf %26, %25 : vector<3x8xf32>
    %28 = vector.broadcast %cst_9 : f32 to vector<3x8xf32>
    %29 = arith.minimumf %28, %27 : vector<3x8xf32>
    %cst_10 = arith.constant 0.000000e+00 : f32
    %30 = vector.broadcast %cst_10 : f32 to vector<3x8xf32>
    %31 = arith.select %7, %30, %29 : vector<3x8xi1>, vector<3x8xf32>
    %cst_11 = arith.constant dense<0.000000e+00> : vector<8xf32>
    %32 = vector.multi_reduction <add>, %31, %cst_11 [0] : vector<3x8xf32> to vector<8xf32>
    %33 = vector.shape_cast %32 : vector<8xf32> to vector<1x8xf32>
    %cst_12 = arith.constant 1.000000e-01 : f32
    %34 = vector.broadcast %cst_12 : f32 to vector<1x8xf32>
    %35 = arith.mulf %34, %23 : vector<1x8xf32>
    %cst_13 = arith.constant 9.21034049 : f32
    %36 = vector.broadcast %cst_13 : f32 to vector<1x8xf32>
    %37 = arith.mulf %36, %33 : vector<1x8xf32>
    %38 = arith.addf %35, %37 : vector<1x8xf32>
    %c1_i32 = arith.constant 1 : i32
    %39 = arith.muli %arg0, %c1_i32 : i32
    %40 = arith.addi %39, %arg1 : i32
    %c8_i32 = arith.constant 8 : i32
    %41 = arith.muli %40, %c8_i32 : i32
    %42 = tpu.iota {dimensions = array<i32: 1>} : vector<1x8xi32>
    %43 = vector.broadcast %41 : i32 to vector<1x8xi32>
    %44 = arith.addi %43, %42 : vector<1x8xi32>
    %c8_i32_14 = arith.constant 8 : i32
    %45 = vector.broadcast %c8_i32_14 : i32 to vector<1x8xi32>
    %46 = arith.cmpi slt, %44, %45 : vector<1x8xi32>
    %cst_15 = arith.constant 0.000000e+00 : f32
    %47 = vector.broadcast %cst_15 : f32 to vector<1x8xf32>
    %48 = arith.select %46, %38, %47 : vector<1x8xi1>, vector<1x8xf32>
    %c0_16 = arith.constant 0 : index
    %c0_17 = arith.constant 0 : index
    %49 = vector.load %arg5[%c0_16, %c0_17] : memref<1x1xf32, #tpu.memory_space<vmem>>, vector<1x1xf32>
    %cst_18 = arith.constant dense<0.000000e+00> : vector<1xf32>
    %50 = vector.multi_reduction <add>, %48, %cst_18 [1] : vector<1x8xf32> to vector<1xf32>
    %51 = vector.shape_cast %50 : vector<1xf32> to vector<1x1xf32>
    %52 = arith.addf %49, %51 : vector<1x1xf32>
    %c0_19 = arith.constant 0 : index
    %c0_20 = arith.constant 0 : index
    %53 = vector.load %arg5[%c0_19, %c0_20] : memref<1x1xf32, #tpu.memory_space<vmem>>, vector<1x1xf32>
    tpu.vector_store %arg5[%c0_19, %c0_20], %52 {strides = array<i32>} : memref<1x1xf32, #tpu.memory_space<vmem>>, vector<1x1xf32>,
    %c0_i32_21 = arith.constant 0 : i32
    %54 = arith.cmpi eq, %arg1, %c0_i32_21 : i32
    %55 = arith.extui %54 : i1 to i32
    %c0_i32_22 = arith.constant 0 : i32
    %56 = arith.cmpi ne, %55, %c0_i32_22 : i32
    scf.if %56 {
      %cst_23 = arith.constant 0.000000e+00 : f32
      %57 = vector.broadcast %cst_23 : f32 to vector<8x128xf32>
      %c0_24 = arith.constant 0 : index
      %c0_25 = arith.constant 0 : index
      %58 = vector.load %arg5[%c0_24, %c0_25] : memref<1x1xf32, #tpu.memory_space<vmem>>, vector<1x1xf32>
      %59 = vector.broadcast %58 : vector<1x1xf32> to vector<8x128xf32>
      %60 = arith.addf %57, %59 : vector<8x128xf32>
      %c0_26 = arith.constant 0 : index
      %c0_27 = arith.constant 0 : index
      %61 = vector.load %arg4[%c0_26, %c0_27] : memref<8x128xf32, #tpu.memory_space<vmem>>, vector<8x128xf32>
      tpu.vector_store %arg4[%c0_26, %c0_27], %60 {strides = array<i32>} : memref<8x128xf32, #tpu.memory_space<vmem>>, vector<8x128xf32>,
    } else {
    }
    return
  }
  func.func @transform_0(%arg0: i32, %arg1: i32) -> (i32, i32) {
    %c1_i32 = arith.constant 1 : i32
    %0 = arith.muli %arg0, %c1_i32 : i32
    %1 = arith.addi %0, %arg1 : i32
    %c0_i32 = arith.constant 0 : i32
    %c0_i32_0 = arith.constant 0 : i32
    return %c0_i32, %1 : i32, i32
  }
  func.func @transform_1(%arg0: i32, %arg1: i32) -> (i32, i32) {
    %c1_i32 = arith.constant 1 : i32
    %0 = arith.muli %arg0, %c1_i32 : i32
    %1 = arith.addi %0, %arg1 : i32
    %c0_i32 = arith.constant 0 : i32
    %c0_i32_0 = arith.constant 0 : i32
    return %c0_i32, %1 : i32, i32
  }
  func.func @transform_2(%arg0: i32, %arg1: i32) -> (i32, i32) {
    %c0_i32 = arith.constant 0 : i32
    %c0_i32_0 = arith.constant 0 : i32
    return %arg0, %c0_i32 : i32, i32
  }
}

</mosaic_0001>

<bundles_post_ra>
// kernel: sce_loss.2
= control target key start
LH: loop header
LB: loop body
LE: loop exit
PB: predicated region body
PF: predicated region fallthrough
CT: control target
= control target key end

     0   :  { %vm50_vm0 = vcmask 0   ;;  %v162_v1 = vmov 0.0   ;;  %vm61_vm1 = vcmask 59392   ;;  %v54_v13 = vlaneseq  ;;  %s196_s0 = inlined_call_operand.vmem [shape: s32[1,8], index: 0, kind: input, shape index: {}]   ;;  %s197_s1 = inlined_call_operand.vmem [shape: f32[8,3], index: 1, kind: input, shape index: {}]   ;;  %s198_s2 = inlined_call_operand.vmem [shape: f32[8,128], index: 2, kind: output, shape index: {}]  }
   0x1   :  { %v42_v0 = vld [vmem:[%s197_s1] sm:$0x7]  ;;  %51 = vst.msk [vmem:[#allocation2] sm:$0x1] %vm50_vm0, %v162_v1  ;;  %vm116_vm4 = vcmask 64512   ;;  %v163_v53 = vmov 0  }
   0x2   :  { %45 = vst [vmem:[#allocation3] sm:$0xf] %v42_v0  ;;  %v55_v17 = vshrl.u32 %v54_v13, 7  ;;  %v151_v18 = vld [vmem:[%s196_s0] ss:$0 sm:$0xff]  ;;  %v110_v46 = vand.u32 127, %v54_v13  ;;  %155 = vset.pattern.permute.xlu0 %v163_v53 }
   0x4   :  { %vm60_vm2 = vcmp.eq.s32.totalorder %v55_v17, %v151_v18  ;;  %vm113_vm3 = vcmp.lt.s32.totalorder %v110_v46, 8 }
   0x8   :  { %v115_v54 = vld [vmem:[#allocation2] sm:$0x1] }
   0x9   :  { %v52_v2 = vld [vmem:[#allocation3] sm:$0x7] }
   0xa   :  { %v62_v3 = vsel %vm61_vm1, %v52_v2, -inf  ;;  %v84_v23 = vsel %vm60_vm2, %v52_v2, 0.0 }
   0xb   :  { %v63_v4 = vrot.slane %v62_v3, 4  ;;  %v85_v24 = vsel %vm61_vm1, %v84_v23, 0.0 }
   0xc   :  { %v86_v25 = vrot.slane %v85_v24, 4 }
   0xd   :  { %v64_v5 = vmax.f32 %v62_v3, %v63_v4 }
   0xe   :  { %v87_v26 = vadd.f32 %v86_v25, %v85_v24 }
   0xf   :  { %v65_v6 = vrot.slane %v64_v5, 2 }
  0x10   :  { %v88_v27 = vrot.slane %v87_v26, 2 }
  0x11   :  { %v66_v7 = vmax.f32 %v64_v5, %v65_v6 }
  0x12   :  { %v89_v30 = vadd.f32 %v88_v27, %v87_v26 }
  0x13   :  { %v67_v8 = vrot.slane %v66_v7, 1 }
  0x14   :  { %v90_v35 = vrot.slane %v89_v30, 1 }
  0x15   :  { %v68_v9 = vmax.f32 %v66_v7, %v67_v8 }
  0x16   :  { %v91_v40 = vadd.f32 %v90_v35, %v89_v30 }
  0x17   :  { %v69_v10 = vsub.f32 %v52_v2, %v68_v9 }
  0x19   :  { %v70_v11 = vmul.f32 1.442695, %v69_v10 }
  0x1b   :  { %156 = vpow2.f32 %v70_v11 }
  0x28   :  { %v157_v12 = vpop.eup %156 }
  0x29   :  { %v72_v14 = vsel %vm61_vm1, %v157_v12, 0.0 }
  0x2a   :  { %v73_v15 = vrot.slane %v72_v14, 4 }
  0x2c   :  { %v74_v16 = vadd.f32 %v73_v15, %v72_v14 }
  0x2e   :  { %v75_v19 = vrot.slane %v74_v16, 2 }
  0x30   :  { %v76_v20 = vadd.f32 %v75_v19, %v74_v16 }
  0x32   :  { %v77_v21 = vrot.slane %v76_v20, 1 }
  0x34   :  { %v78_v22 = vadd.f32 %v77_v21, %v76_v20 }
  0x36   :  { %158 = vrcp.f32 %v78_v22 }
  0x37   :  { %160 = vlog2.f32 %v78_v22 }
  0x43   :  { %v159_v28 = vpop.eup %158 }
  0x44   :  { %v93_v29 = vmul.f32 %v159_v28, %v157_v12  ;;  %v161_v32 = vpop.eup %160 }
  0x45   :  { %v82_v34 = vmul.f32 0.6931472, %v161_v32 }
  0x46   :  { %v94_v31 = vmax.f32 %v93_v29, 1e-07 }
  0x47   :  { %v83_v39 = vadd.f32 %v82_v34, %v68_v9 }
  0x48   :  { %v95_v33 = vmin.f32 %v94_v31, 1.0 }
  0x49   :  { %v92_v43 = vsub.f32 %v83_v39, %v91_v40 }
  0x4a   :  { %v96_v36 = vsel %vm60_vm2, 0.0, %v95_v33 }
  0x4b   :  { %v97_v37 = vsel %vm61_vm1, %v96_v36, 0.0  ;;  %v104_v48 = vmul.f32 0.1, %v92_v43 }
  0x4c   :  { %v98_v38 = vrot.slane %v97_v37, 4 }
  0x4e   :  { %v99_v41 = vadd.f32 %v98_v38, %v97_v37 }
  0x50   :  { %v100_v42 = vrot.slane %v99_v41, 2 }
  0x52   :  { %v101_v44 = vadd.f32 %v100_v42, %v99_v41 }
  0x54   :  { %v102_v45 = vrot.slane %v101_v44, 1 }
  0x56   :  { %v103_v47 = vadd.f32 %v102_v45, %v101_v44 }
  0x58   :  { %v105_v49 = vmul.f32 9.2103405, %v103_v47 }
  0x5a   :  { %v106_v50 = vadd.f32 %v105_v49, %v104_v48 }
  0x5c   :  { %v114_v51 = vsel %vm113_vm3, %v106_v50, 0.0 }
  0x5d   :  { %v117_v52 = vsel %vm116_vm4, %v114_v51, 0.0 }
  0x5e   :  { %118 = vadd.xlane.f32.xlu0 %v117_v52 }
  0xe7   :  { %v119_v55 = vpop.xlane.xlu0 %118 }
  0xe8   :  { %v120_v56 = vadd.f32 %v119_v55, %v115_v54 }
  0xea   :  { %122 = vst.msk [vmem:[#allocation2] sm:$0x1] %vm50_vm0, %v120_v56 }
  0xf1   :  { %v152_v57 = vld [vmem:[#allocation2] ss:$0 sm:$0xff] }
  0xf2   :  { %133 = vperm.xlu0 %155, %v152_v57  }
 0x16d   :  { %v134_v58 = vpop.permute.xlu0 %133 }
 0x16e   :  { %137 = vst [vmem:[%s198_s2] sm:$0xff] %v134_v58 }

</bundles_post_ra>
